<compile_context>
chip_gen: v6e
topology: v6e:2x2x1
jax: 0.10.0
libtpu: 0.0.40
codegen_flags: <defaults>
</compile_context>

<pallas_src>
import jax
import jax.numpy as jnp
from jax.experimental import pallas as pl
from jax.experimental.pallas import tpu as pltpu

FPAD = 128  # feature / hidden dims zero-padded to one lane-register width


def _round_up(x, m):
    return (x + m - 1) // m * m


def _pad_mat(w, rows, cols):
    out = jnp.zeros((rows, cols), jnp.float32)
    return out.at[: w.shape[0], : w.shape[1]].set(w.astype(jnp.float32))


def _pad_vec(b, cols):
    out = jnp.zeros((1, cols), jnp.float32)
    return out.at[0, : b.shape[0]].set(b.astype(jnp.float32))


# ---------------------------------------------------------------------------
# Phase 1: h = MLP((1+eps)*x + A @ x)  (GIN aggregation + self term + MLP).
# Grid: (row tiles of N, reduction tiles over N) -- reduction axis last.
# ---------------------------------------------------------------------------
def gin_mlp_kernel(adj_ref, x_ref, xs_ref, w1_ref, b1_ref, w2_ref, b2_ref,
                   w3_ref, b3_ref, hcol_ref, acc_ref):
    k = pl.program_id(1)

    @pl.when(k == 0)
    def _():
        # Initialize the accumulator with the exact f32 GIN self term
        # (1+eps) * x[i]  (precomputed on the host, DMA'd once per row tile).
        acc_ref[...] = xs_ref[...]

    # Aggregation: z_tile += A[i, k] @ x[k].  adj is stored bf16 in HBM (halves
    # the O(N^2) read; entries are exact small integer edge counts); upcast so
    # the contraction itself stays full f32 and matches the f32 reference.
    acc_ref[...] += jnp.dot(adj_ref[...].astype(jnp.float32), x_ref[...],
                            preferred_element_type=jnp.float32)

    @pl.when(k == pl.num_programs(1) - 1)
    def _():
        z = acc_ref[...]                                                   # [TM, FPAD]
        h = jnp.maximum(
            jnp.dot(z, w1_ref[...], preferred_element_type=jnp.float32) + b1_ref[...],
            0.0)
        h = jnp.maximum(
            jnp.dot(h, w2_ref[...], preferred_element_type=jnp.float32) + b2_ref[...],
            0.0)
        h = jnp.maximum(
            jnp.dot(h, w3_ref[...], preferred_element_type=jnp.float32) + b3_ref[...],
            0.0)
        # Last Linear has out_features=1: only lane 0 is live.  Keep just that
        # lane so phase 2 never contracts over 128 dead lanes.
        hcol_ref[...] = h[:, :1]


# ---------------------------------------------------------------------------
# Phase 2: out[i, j] = h[i] * h[j]  (rank-1 outer product, pure VPU broadcast).
# ---------------------------------------------------------------------------
def outer_kernel(hcol_ref, hrow_ref, out_ref):
    # [TM, 1] (lane broadcast) * [1, TN] (sublane broadcast) -> [TM, TN]
    out_ref[...] = hcol_ref[...] * hrow_ref[...]


def node_large_model(node_feats, edge_idx, params):
    """node_feats: [N, gin_in_size] f32, edge_idx: [2, E] int32."""
    W1, b1, W2, b2, W3, b3, eps = params
    N, F = node_feats.shape

    # Biggest tile that comfortably fits VMEM (bigger tiles => closer to HBM
    # roofline and fewer re-reads of x across the reduction axis).
    if N <= 128:
        TILE = 128
    elif N <= 1024:
        TILE = 256
    else:
        TILE = 512
    Np = _round_up(max(N, TILE), TILE)
    n_tiles = Np // TILE

    # ---- JAX-side glue: padding + dense adjacency ---------------------------
    # TODO(synk): for sparse graphs (E << N^2) the scatter-add aggregation could be
    # done with scalar-prefetched edge indices instead of a dense O(N^2) adjacency.
    x_pad = jnp.zeros((Np, FPAD), jnp.float32).at[:N, :F].set(
        node_feats.astype(jnp.float32))
    xs_pad = (1.0 + jnp.float32(eps)) * x_pad          # exact f32 self term
    src, dst = edge_idx[0], edge_idx[1]
    adj = jnp.zeros((Np, Np), jnp.float32).at[dst, src].add(1.0)   # A[i,j] = #edges j->i
    # bf16 is exact for integer edge counts < 256 (self term handled in f32).
    adj_bf16 = adj.astype(jnp.bfloat16)

    w1p = _pad_mat(W1, FPAD, FPAD)
    w2p = _pad_mat(W2, FPAD, FPAD)
    w3p = _pad_mat(W3, FPAD, FPAD)
    b1p = _pad_vec(b1, FPAD)
    b2p = _pad_vec(b2, FPAD)
    b3p = _pad_vec(b3, FPAD)

    # ---- Phase 1: tiled aggregation + MLP -> h_col [Np, 1] -------------------
    h_col = pl.pallas_call(
        gin_mlp_kernel,
        out_shape=jax.ShapeDtypeStruct((Np, 1), jnp.float32),
        grid_spec=pltpu.PrefetchScalarGridSpec(
            num_scalar_prefetch=0,
            grid=(n_tiles, n_tiles),
            in_specs=[
                pl.BlockSpec((TILE, TILE), lambda i, k: (i, k)),   # A tile (bf16)
                pl.BlockSpec((TILE, FPAD), lambda i, k: (k, 0)),   # x[k] tile
                pl.BlockSpec((TILE, FPAD), lambda i, k: (i, 0)),   # (1+eps)*x[i] (per-row resident)
                pl.BlockSpec((FPAD, FPAD), lambda i, k: (0, 0)),   # W1 (resident)
                pl.BlockSpec((1, FPAD),    lambda i, k: (0, 0)),   # b1
                pl.BlockSpec((FPAD, FPAD), lambda i, k: (0, 0)),   # W2
                pl.BlockSpec((1, FPAD),    lambda i, k: (0, 0)),   # b2
                pl.BlockSpec((FPAD, FPAD), lambda i, k: (0, 0)),   # W3
                pl.BlockSpec((1, FPAD),    lambda i, k: (0, 0)),   # b3
            ],
            out_specs=pl.BlockSpec((TILE, 1), lambda i, k: (i, 0)),
            scratch_shapes=[pltpu.VMEM((TILE, FPAD), jnp.float32)],
        ),
        compiler_params=pltpu.CompilerParams(
            dimension_semantics=("parallel", "arbitrary"),
            vmem_limit_bytes=32 * 1024 * 1024,   # safe on v5e/v6e/v7x for these tiles
        ),
    )(adj_bf16, x_pad, xs_pad, w1p, b1p, w2p, b2p, w3p, b3p)

    # ---- Phase 2: out = h h^T over a 2-D parallel output grid ----------------
    h_row = h_col.reshape(1, Np)   # O(N) re-layout glue for the lane-major operand
    out_pad = pl.pallas_call(
        outer_kernel,
        out_shape=jax.ShapeDtypeStruct((Np, Np), jnp.float32),
        grid_spec=pltpu.PrefetchScalarGridSpec(
            num_scalar_prefetch=0,
            grid=(n_tiles, n_tiles),
            in_specs=[
                pl.BlockSpec((TILE, 1), lambda i, j: (i, 0)),
                pl.BlockSpec((1, TILE), lambda i, j: (0, j)),
            ],
            out_specs=pl.BlockSpec((TILE, TILE), lambda i, j: (i, j)),
        ),
        compiler_params=pltpu.CompilerParams(
            dimension_semantics=("parallel", "parallel"),
            vmem_limit_bytes=32 * 1024 * 1024,
        ),
    )(h_col, h_row)

    return out_pad[:N, :N]


def reference_model(node_feats, edge_idx, params):
    W1, b1, W2, b2, W3, b3, eps = params
    src, dst = edge_idx[0], edge_idx[1]
    agg = jnp.zeros_like(node_feats).at[dst].add(node_feats[src])
    z = (1.0 + eps) * node_feats + agg
    h = jax.nn.relu(z @ W1 + b1)
    h = jax.nn.relu(h @ W2 + b2)
    h = jax.nn.relu(h @ W3 + b3)
    return h @ h.T


if __name__ == "__main__":
    gin_in, gin_hidden, gin_out = 3, 16, 16
    N, E = 8, 16  # small graph: 8 nodes, 16 directed edges

    key = jax.random.PRNGKey(0)
    k1, k2, k3, k4, k5, k6, kx, ke = jax.random.split(key, 8)

    # Deterministic synthetic parameters (Linear weights stored as [in, out], i.e. torch weight.T).
    W1 = jax.random.normal(k1, (gin_in, gin_hidden), jnp.float32) * 0.4
    b1 = jax.random.normal(k2, (gin_hidden,), jnp.float32) * 0.1
    W2 = jax.random.normal(k3, (gin_hidden, gin_out), jnp.float32) * 0.2
    b2 = jax.random.normal(k4, (gin_out,), jnp.float32) * 0.1
    W3 = jax.random.normal(k5, (gin_out, 1), jnp.float32) * 0.3
    b3 = jax.random.normal(k6, (1,), jnp.float32) * 0.1
    eps = 0.0  # GINConv(train_eps=True) initial eps value
    params = (W1, b1, W2, b2, W3, b3, eps)

    node_feats = jax.random.normal(kx, (N, gin_in), jnp.float32)
    edge_idx = jax.random.randint(ke, (2, E), 0, N, dtype=jnp.int32)

    out = node_large_model(node_feats, edge_idx, params)
    out = jax.block_until_ready(out)

    ref = reference_model(node_feats, edge_idx, params)
    assert out.shape == (N, N)
    assert jnp.allclose(out, ref, rtol=1e-5, atol=1e-5), "mismatch vs reference"

    print("KERNEL_OK")
</pallas_src>

<mosaic_0001>
module attributes {stable_mosaic.version = 11 : i64} {
  func.func @gin_mlp_kernel(%arg0: i32, %arg1: i32, %arg2: memref<128x128xbf16, #tpu.memory_space<vmem>>, %arg3: memref<128x128xf32, #tpu.memory_space<vmem>>, %arg4: memref<128x128xf32, #tpu.memory_space<vmem>>, %arg5: memref<128x128xf32, #tpu.memory_space<vmem>>, %arg6: memref<1x128xf32, #tpu.memory_space<vmem>>, %arg7: memref<128x128xf32, #tpu.memory_space<vmem>>, %arg8: memref<1x128xf32, #tpu.memory_space<vmem>>, %arg9: memref<128x128xf32, #tpu.memory_space<vmem>>, %arg10: memref<1x128xf32, #tpu.memory_space<vmem>>, %arg11: memref<128x1xf32, #tpu.memory_space<vmem>>, %arg12: memref<128x128xf32, #tpu.memory_space<vmem>>) attributes {dimension_semantics = [#tpu.dimension_semantics<parallel>, #tpu.dimension_semantics<arbitrary>], iteration_bounds = array<i64: 1, 1>, scalar_prefetch = 0 : i64, scratch_operands = 1 : i64, tpu.core_type = #tpu.core_type<tc>, window_params = [{transform_indices = @transform_0, window_bounds = array<i64: 128, 128>}, {transform_indices = @transform_1, window_bounds = array<i64: 128, 128>}, {transform_indices = @transform_2, window_bounds = array<i64: 128, 128>}, {pipeline_mode = #tpu.pipeline_mode<synchronous>, transform_indices = @transform_3, window_bounds = array<i64: 128, 128>}, {pipeline_mode = #tpu.pipeline_mode<synchronous>, transform_indices = @transform_4, window_bounds = array<i64: 1, 128>}, {pipeline_mode = #tpu.pipeline_mode<synchronous>, transform_indices = @transform_5, window_bounds = array<i64: 128, 128>}, {pipeline_mode = #tpu.pipeline_mode<synchronous>, transform_indices = @transform_6, window_bounds = array<i64: 1, 128>}, {pipeline_mode = #tpu.pipeline_mode<synchronous>, transform_indices = @transform_7, window_bounds = array<i64: 128, 128>}, {pipeline_mode = #tpu.pipeline_mode<synchronous>, transform_indices = @transform_8, window_bounds = array<i64: 1, 128>}, {transform_indices = @transform_9, window_bounds = array<i64: 128, 1>}]} {
    %c0_i32 = arith.constant 0 : i32
    %0 = arith.cmpi eq, %arg1, %c0_i32 : i32
    %1 = arith.extui %0 : i1 to i32
    %c0_i32_0 = arith.constant 0 : i32
    %2 = arith.cmpi ne, %1, %c0_i32_0 : i32
    scf.if %2 {
      %c0_10 = arith.constant 0 : index
      %c0_11 = arith.constant 0 : index
      %13 = vector.load %arg4[%c0_10, %c0_11] : memref<128x128xf32, #tpu.memory_space<vmem>>, vector<128x128xf32>
      %c0_12 = arith.constant 0 : index
      %c0_13 = arith.constant 0 : index
      %14 = vector.load %arg12[%c0_12, %c0_13] : memref<128x128xf32, #tpu.memory_space<vmem>>, vector<128x128xf32>
      tpu.vector_store %arg12[%c0_12, %c0_13], %13 {strides = array<i32>} : memref<128x128xf32, #tpu.memory_space<vmem>>, vector<128x128xf32>,
    } else {
    }
    %c0 = arith.constant 0 : index
    %c0_1 = arith.constant 0 : index
    %3 = vector.load %arg12[%c0, %c0_1] : memref<128x128xf32, #tpu.memory_space<vmem>>, vector<128x128xf32>
    %c0_2 = arith.constant 0 : index
    %c0_3 = arith.constant 0 : index
    %4 = vector.load %arg2[%c0_2, %c0_3] : memref<128x128xbf16, #tpu.memory_space<vmem>>, vector<128x128xbf16>
    %5 = arith.extf %4 : vector<128x128xbf16> to vector<128x128xf32>
    %c0_4 = arith.constant 0 : index
    %c0_5 = arith.constant 0 : index
    %6 = vector.load %arg3[%c0_4, %c0_5] : memref<128x128xf32, #tpu.memory_space<vmem>>, vector<128x128xf32>
    %cst = arith.constant dense<0.000000e+00> : vector<128x128xf32>
    %7 = tpu.matmul %5, %6, %cst {dimension_numbers = #tpu.dot_dimension_numbers<[1], [0], [0], [1], [0, 0, 1, 1], [], []>} : vector<128x128xf32>, vector<128x128xf32>, vector<128x128xf32> -> vector<128x128xf32>
    %8 = arith.addf %3, %7 : vector<128x128xf32>
    %c0_6 = arith.constant 0 : index
    %c0_7 = arith.constant 0 : index
    %9 = vector.load %arg12[%c0_6, %c0_7] : memref<128x128xf32, #tpu.memory_space<vmem>>, vector<128x128xf32>
    tpu.vector_store %arg12[%c0_6, %c0_7], %8 {strides = array<i32>} : memref<128x128xf32, #tpu.memory_space<vmem>>, vector<128x128xf32>,
    %c0_i32_8 = arith.constant 0 : i32
    %10 = arith.cmpi eq, %arg1, %c0_i32_8 : i32
    %11 = arith.extui %10 : i1 to i32
    %c0_i32_9 = arith.constant 0 : i32
    %12 = arith.cmpi ne, %11, %c0_i32_9 : i32
    scf.if %12 {
      %c0_10 = arith.constant 0 : index
      %c0_11 = arith.constant 0 : index
      %13 = vector.load %arg12[%c0_10, %c0_11] : memref<128x128xf32, #tpu.memory_space<vmem>>, vector<128x128xf32>
      %c0_12 = arith.constant 0 : index
      %c0_13 = arith.constant 0 : index
      %14 = vector.load %arg5[%c0_12, %c0_13] : memref<128x128xf32, #tpu.memory_space<vmem>>, vector<128x128xf32>
      %cst_14 = arith.constant dense<0.000000e+00> : vector<128x128xf32>
      %15 = tpu.matmul %13, %14, %cst_14 {dimension_numbers = #tpu.dot_dimension_numbers<[1], [0], [0], [1], [0, 0, 1, 1], [], []>} : vector<128x128xf32>, vector<128x128xf32>, vector<128x128xf32> -> vector<128x128xf32>
      %c0_15 = arith.constant 0 : index
      %c0_16 = arith.constant 0 : index
      %16 = vector.load %arg6[%c0_15, %c0_16] : memref<1x128xf32, #tpu.memory_space<vmem>>, vector<1x128xf32>
      %17 = vector.broadcast %16 : vector<1x128xf32> to vector<128x128xf32>
      %18 = arith.addf %15, %17 : vector<128x128xf32>
      %cst_17 = arith.constant 0.000000e+00 : f32
      %19 = vector.broadcast %cst_17 : f32 to vector<128x128xf32>
      %20 = arith.maximumf %18, %19 : vector<128x128xf32>
      %c0_18 = arith.constant 0 : index
      %c0_19 = arith.constant 0 : index
      %21 = vector.load %arg7[%c0_18, %c0_19] : memref<128x128xf32, #tpu.memory_space<vmem>>, vector<128x128xf32>
      %cst_20 = arith.constant dense<0.000000e+00> : vector<128x128xf32>
      %22 = tpu.matmul %20, %21, %cst_20 {dimension_numbers = #tpu.dot_dimension_numbers<[1], [0], [0], [1], [0, 0, 1, 1], [], []>} : vector<128x128xf32>, vector<128x128xf32>, vector<128x128xf32> -> vector<128x128xf32>
      %c0_21 = arith.constant 0 : index
      %c0_22 = arith.constant 0 : index
      %23 = vector.load %arg8[%c0_21, %c0_22] : memref<1x128xf32, #tpu.memory_space<vmem>>, vector<1x128xf32>
      %24 = vector.broadcast %23 : vector<1x128xf32> to vector<128x128xf32>
      %25 = arith.addf %22, %24 : vector<128x128xf32>
      %cst_23 = arith.constant 0.000000e+00 : f32
      %26 = vector.broadcast %cst_23 : f32 to vector<128x128xf32>
      %27 = arith.maximumf %25, %26 : vector<128x128xf32>
      %c0_24 = arith.constant 0 : index
      %c0_25 = arith.constant 0 : index
      %28 = vector.load %arg9[%c0_24, %c0_25] : memref<128x128xf32, #tpu.memory_space<vmem>>, vector<128x128xf32>
      %cst_26 = arith.constant dense<0.000000e+00> : vector<128x128xf32>
      %29 = tpu.matmul %27, %28, %cst_26 {dimension_numbers = #tpu.dot_dimension_numbers<[1], [0], [0], [1], [0, 0, 1, 1], [], []>} : vector<128x128xf32>, vector<128x128xf32>, vector<128x128xf32> -> vector<128x128xf32>
      %c0_27 = arith.constant 0 : index
      %c0_28 = arith.constant 0 : index
      %30 = vector.load %arg10[%c0_27, %c0_28] : memref<1x128xf32, #tpu.memory_space<vmem>>, vector<1x128xf32>
      %31 = vector.broadcast %30 : vector<1x128xf32> to vector<128x128xf32>
      %32 = arith.addf %29, %31 : vector<128x128xf32>
      %cst_29 = arith.constant 0.000000e+00 : f32
      %33 = vector.broadcast %cst_29 : f32 to vector<128x128xf32>
      %34 = arith.maximumf %32, %33 : vector<128x128xf32>
      %35 = vector.extract_strided_slice %34 {offsets = [0, 0], sizes = [128, 1], strides = [1, 1]} : vector<128x128xf32> to vector<128x1xf32>
      %c0_30 = arith.constant 0 : index
      %c0_31 = arith.constant 0 : index
      %36 = vector.load %arg11[%c0_30, %c0_31] : memref<128x1xf32, #tpu.memory_space<vmem>>, vector<128x1xf32>
      tpu.vector_store %arg11[%c0_30, %c0_31], %35 {strides = array<i32>} : memref<128x1xf32, #tpu.memory_space<vmem>>, vector<128x1xf32>,
    } else {
    }
    return
  }
  func.func @transform_0(%arg0: i32, %arg1: i32) -> (i32, i32) {
    %c0_i32 = arith.constant 0 : i32
    return %arg0, %arg1 : i32, i32
  }
  func.func @transform_1(%arg0: i32, %arg1: i32) -> (i32, i32) {
    %c0_i32 = arith.constant 0 : i32
    %c0_i32_0 = arith.constant 0 : i32
    return %arg1, %c0_i32 : i32, i32
  }
  func.func @transform_2(%arg0: i32, %arg1: i32) -> (i32, i32) {
    %c0_i32 = arith.constant 0 : i32
    %c0_i32_0 = arith.constant 0 : i32
    return %arg0, %c0_i32 : i32, i32
  }
  func.func @transform_3(%arg0: i32, %arg1: i32) -> (i32, i32) {
    %c0_i32 = arith.constant 0 : i32
    %c0_i32_0 = arith.constant 0 : i32
    %c0_i32_1 = arith.constant 0 : i32
    return %c0_i32, %c0_i32_0 : i32, i32
  }
  func.func @transform_4(%arg0: i32, %arg1: i32) -> (i32, i32) {
    %c0_i32 = arith.constant 0 : i32
    %c0_i32_0 = arith.constant 0 : i32
    %c0_i32_1 = arith.constant 0 : i32
    return %c0_i32, %c0_i32_0 : i32, i32
  }
  func.func @transform_5(%arg0: i32, %arg1: i32) -> (i32, i32) {
    %c0_i32 = arith.constant 0 : i32
    %c0_i32_0 = arith.constant 0 : i32
    %c0_i32_1 = arith.constant 0 : i32
    return %c0_i32, %c0_i32_0 : i32, i32
  }
  func.func @transform_6(%arg0: i32, %arg1: i32) -> (i32, i32) {
    %c0_i32 = arith.constant 0 : i32
    %c0_i32_0 = arith.constant 0 : i32
    %c0_i32_1 = arith.constant 0 : i32
    return %c0_i32, %c0_i32_0 : i32, i32
  }
  func.func @transform_7(%arg0: i32, %arg1: i32) -> (i32, i32) {
    %c0_i32 = arith.constant 0 : i32
    %c0_i32_0 = arith.constant 0 : i32
    %c0_i32_1 = arith.constant 0 : i32
    return %c0_i32, %c0_i32_0 : i32, i32
  }
  func.func @transform_8(%arg0: i32, %arg1: i32) -> (i32, i32) {
    %c0_i32 = arith.constant 0 : i32
    %c0_i32_0 = arith.constant 0 : i32
    %c0_i32_1 = arith.constant 0 : i32
    return %c0_i32, %c0_i32_0 : i32, i32
  }
  func.func @transform_9(%arg0: i32, %arg1: i32) -> (i32, i32) {
    %c0_i32 = arith.constant 0 : i32
    %c0_i32_0 = arith.constant 0 : i32
    return %arg0, %c0_i32 : i32, i32
  }
}

</mosaic_0001>

<bundles_post_ra>
// kernel: tpu_custom_call.1
= control target key start
LH: loop header
LB: loop body
LE: loop exit
PB: predicated region body
PF: predicated region fallthrough
CT: control target
= control target key end

     0   :  { %14 = vsyncpa [#allocation4], 0  ;;  %s1689_s0 = inlined_call_operand.hbm [shape: bf16[128,128], index: 0, kind: input, shape index: {}]   ;;  %s1690_s1 = inlined_call_operand.hbm [shape: f32[128,128], index: 1, kind: input, shape index: {}]   ;;  %s1691_s2 = inlined_call_operand.hbm [shape: f32[128,128], index: 2, kind: input, shape index: {}]   ;;  %s1692_s3 = inlined_call_operand.hbm [shape: f32[128,128], index: 3, kind: input, shape index: {}]   ;;  %s1693_s4 = inlined_call_operand.vmem [shape: f32[1,128], index: 4, kind: input, shape index: {}]   ;;  %s1694_s5 = inlined_call_operand.hbm [shape: f32[128,128], index: 5, kind: input, shape index: {}]   ;;  %s1695_s6 = inlined_call_operand.vmem [shape: f32[1,128], index: 6, kind: input, shape index: {}]   ;;  %s1696_s7 = inlined_call_operand.hbm [shape: f32[128,128], index: 7, kind: input, shape index: {}]   ;;  %s1697_s8 = inlined_call_operand.vmem [shape: f32[1,128], index: 8, kind: input, shape index: {}]   ;;  %s1698_s9 = inlined_call_operand.vmem [shape: f32[128,1], index: 9, kind: output, shape index: {}]  }
   0x1   :  { %15 = vsyncpa [#allocation6], 0 }
   0x2   :  { %16 = vsyncpa [#allocation9], 0 }
   0x3   :  { %17 = vsyncpa [#allocation12], 0  ;;  %s1519_s30 = smov [#allocation5]  }
   0x4   :  { %s35_s10 = sshll.u32 %s1519_s30, 4  ;;  %s36_s10 = int_to_ptr.vmem [resolvable:$true] %s35_s10 }
   0x5   :  { %s1399_s11 = scalar_lea.vmem %s36_s10, 2048  ;;  %p1404_p1 = scmp.lt.s32.totalorder %s36_s10, %s36_s10 }
   0x6   :  { %p1400_p0 = scmp.ne.s32.totalorder %s36_s10, %s1399_s11  ;;  %p1405_p2 = scmp.lt.s32.totalorder %s1399_s11, %s1399_s11 }
   0x8   :  { %p1406_p3 = por %p1405_p2, %p1404_p1 }
   0xa   :  { %p1407_p4 = pnand %p1406_p3, %p1400_p0 }
   0xc   :  { %1410 = shalt.err (!%p1407_p4)
}
   0xd   :  { %s1520_s12 = smov 128   ;;  %s1521_s13 = smov 8  }
   0xe   :  { %41 = dma.hbm_to_vmem [thread:$0]  %s1690_s1, 2048, %s36_s10, [#allocation6], %s1520_s12, %s1520_s12, %s1521_s13  }
   0xf   :  { %s1522_s16 = smov [#allocation8]   ;;  %s1523_s18 = smov [#allocation3]  }
  0x10   :  { %s59_s17 = sshll.u32 %s1522_s16, 4  ;;  %s23_s19 = sshll.u32 %s1523_s18, 4  ;;  %s60_s17 = int_to_ptr.vmem [resolvable:$true] %s59_s17  ;;  %s24_s19 = int_to_ptr.vmem [resolvable:$true] %s23_s19 }
  0x11   :  { %s1419_s20 = scalar_lea.vmem %s60_s17, 2048  ;;  %p1424_p6 = scmp.lt.s32.totalorder %s60_s17, %s60_s17 }
  0x12   :  { %p1420_p5 = scmp.ne.s32.totalorder %s60_s17, %s1419_s20  ;;  %p1425_p7 = scmp.lt.s32.totalorder %s1419_s20, %s1419_s20 }
  0x14   :  { %p1426_p8 = por %p1425_p7, %p1424_p6 }
  0x16   :  { %p1427_p9 = pnand %p1426_p8, %p1420_p5 }
  0x18   :  { %1430 = shalt.err (!%p1427_p9)
}
  0x19   :  { %65 = dma.hbm_to_vmem [thread:$0]  %s1692_s3, 2048, %s60_s17, [#allocation9], %s1520_s12, %s1520_s12, %s1521_s13  }
  0x1a   :  { %s1439_s1 = scalar_lea.vmem %s24_s19, 1024  ;;  %p1444_p11 = scmp.lt.s32.totalorder %s24_s19, %s24_s19 }
  0x1b   :  { %p1440_p10 = scmp.ne.s32.totalorder %s24_s19, %s1439_s1  ;;  %p1445_p12 = scmp.lt.s32.totalorder %s1439_s1, %s1439_s1 }
  0x1d   :  { %p1446_p13 = por %p1445_p12, %p1444_p11 }
  0x1f   :  { %p1447_p0 = pnand %p1446_p13, %p1440_p10 }
  0x21   :  { %1450 = shalt.err (!%p1447_p0)
}
  0x22   :  { %s1524_s23 = smov 64   ;;  %s1525_s24 = smov 4  }
  0x23   :  { %29 = dma.hbm_to_vmem [thread:$0]  %s1689_s0, 1024, %s24_s19, [#allocation4], %s1524_s23, %s1524_s23, %s1525_s24  }
  0x24   :  { %s1526_s27 = smov [#allocation7]   ;;  %s1527_s29 = smov [#allocation10]  }
  0x25   :  { %s47_s28 = sshll.u32 %s1526_s27, 4  ;;  %s73_s30 = sshll.u32 %s1527_s29, 4  ;;  %s48_s28 = int_to_ptr.vmem [resolvable:$true] %s47_s28  ;;  %s74_s30 = int_to_ptr.vmem [resolvable:$true] %s73_s30 }
  0x26   :  { %s1459_s3 = scalar_lea.vmem %s48_s28, 2048  ;;  %p1464_p2 = scmp.lt.s32.totalorder %s48_s28, %s48_s28 }
  0x27   :  { %p1460_p1 = scmp.ne.s32.totalorder %s48_s28, %s1459_s3  ;;  %p1465_p3 = scmp.lt.s32.totalorder %s1459_s3, %s1459_s3 }
  0x29   :  { %p1466_p4 = por %p1465_p3, %p1464_p2 }
  0x2b   :  { %p1467_p5 = pnand %p1466_p4, %p1460_p1 }
  0x2d   :  { %1470 = shalt.err (!%p1467_p5)
}
  0x2e   :  { %53 = dma.hbm_to_vmem [thread:$0]  %s1691_s2, 2048, %s48_s28, [#allocation6], %s1520_s12, %s1520_s12, %s1521_s13  }
  0x2f   :  { %s1479_s0 = scalar_lea.vmem %s74_s30, 2048  ;;  %p1484_p7 = scmp.lt.s32.totalorder %s74_s30, %s74_s30 }
  0x30   :  { %p1480_p6 = scmp.ne.s32.totalorder %s74_s30, %s1479_s0  ;;  %p1485_p8 = scmp.lt.s32.totalorder %s1479_s0, %s1479_s0 }
  0x32   :  { %p1486_p9 = por %p1485_p8, %p1484_p7 }
  0x34   :  { %p1487_p10 = pnand %p1486_p9, %p1480_p6 }
  0x36   :  { %1490 = shalt.err (!%p1487_p10)
}
  0x37   :  { %79 = dma.hbm_to_vmem [thread:$0]  %s1694_s5, 2048, %s74_s30, [#allocation9], %s1520_s12, %s1520_s12, %s1521_s13  }
  0x38   :  { %s1528_s16 = smov [#allocation11]  }
  0x39   :  { %s87_s17 = sshll.u32 %s1528_s16, 4  ;;  %s88_s17 = int_to_ptr.vmem [resolvable:$true] %s87_s17 }
  0x3a   :  { %s1499_s18 = scalar_lea.vmem %s88_s17, 2048  ;;  %p1504_p12 = scmp.lt.s32.totalorder %s88_s17, %s88_s17 }
  0x3b   :  { %p1500_p11 = scmp.ne.s32.totalorder %s88_s17, %s1499_s18  ;;  %p1505_p13 = scmp.lt.s32.totalorder %s1499_s18, %s1499_s18 }
  0x3d   :  { %p1506_p0 = por %p1505_p13, %p1504_p12 }
  0x3f   :  { %p1507_p1 = pnand %p1506_p0, %p1500_p11 }
  0x41   :  { %1510 = shalt.err (!%p1507_p1)
}
  0x42   :  { %93 = dma.hbm_to_vmem [thread:$0]  %s1696_s7, 2048, %s88_s17, [#allocation12], %s1520_s12, %s1520_s12, %s1521_s13  }
  0x43   :  { %1511 = dma.done.wait [#allocation4], 1024  }
  0x44   :  { %1512 = vsyncadd [#allocation4], 4294966272 }
  0x45   :  { %1513 = dma.done.wait [#allocation6], 4096  }
  0x46   :  { %1514 = vsyncadd [#allocation6], 4294963200 }
  0x47   :  { %1515 = dma.done.wait [#allocation9], 4096  }
  0x48   :  { %1516 = vsyncadd [#allocation9], 4294963200 }
  0x49   :  { %1517 = dma.done.wait [#allocation12], 2048  }
  0x4a   :  { %1518 = vsyncadd [#allocation12], 4294965248  ;;  %v213_v0 = vld [vmem:[#allocation5 + $0x78] sm:$0xff]  ;;  %v212_v1 = vld [vmem:[#allocation5 + $0x70] sm:$0xff]  ;;  %vm962_vm0 = vcmask 7168  }
  0x4b   :  { %1157 = vmatprep.subr.mxu0 %v213_v0  ;;  %v211_v2 = vld [vmem:[#allocation5 + $0x68] sm:$0xff]  ;;  %v210_v3 = vld [vmem:[#allocation5 + $0x60] sm:$0xff]  ;;  %v209_v5 = vld [vmem:[#allocation5 + $0x58] sm:$0xff] }
  0x4c   :  { %1158 = vmatpush3.msra.mxu0 %v213_v0  ;;  %v1612_v4 = vld [vmem:[#allocation3] sm:$0xff]   ;;  %v208_v7 = vld [vmem:[#allocation5 + $0x50] sm:$0xff]  ;;  %v425_v8 = vld [vmem:[#allocation8 + $0x78] sm:$0xff] }
  0x4d   :  { %1159 = vmatprep.subr.mxu0 %v212_v1  ;;  %v992_v6 = vunpack.c.l.bf16 %v1612_v4  ;;  %v424_v9 = vld [vmem:[#allocation8 + $0x70] sm:$0xff]  ;;  %1213 = vmatprep.subr.mxu1 %v425_v8  ;;  %v207_v10 = vld [vmem:[#allocation5 + $0x48] sm:$0xff]  ;;  %v206_v12 = vld [vmem:[#allocation5 + $0x40] sm:$0xff]  ;;  %v993_v31 = vunpack.c.h.bf16 %v1612_v4 }
  0x4e   :  { %1160 = vmatpush3.msra.mxu0 %v212_v1  ;;  %1214 = vmatpush3.msra.mxu1 %v425_v8  ;;  %v423_v11 = vld [vmem:[#allocation8 + $0x68] sm:$0xff]  ;;  %v422_v13 = vld [vmem:[#allocation8 + $0x60] sm:$0xff]  ;;  %v205_v14 = vld [vmem:[#allocation5 + $0x38] sm:$0xff] }
  0x4f   :  { %1161 = vmatprep.subr.mxu0 %v211_v2  ;;  %1189 = vmatprep.mubr.f32.mxu0 %v992_v6  ;;  %v421_v15 = vld [vmem:[#allocation8 + $0x58] sm:$0xff]  ;;  %v204_v16 = vld [vmem:[#allocation5 + $0x30] sm:$0xff]  ;;  %v203_v18 = vld [vmem:[#allocation5 + $0x28] sm:$0xff] }
  0x50   :  { %1162 = vmatpush3.msra.mxu0 %v211_v2  ;;  %1215 = vmatprep.subr.mxu1 %v424_v9  ;;  %v420_v17 = vld [vmem:[#allocation8 + $0x50] sm:$0xff]  ;;  %v419_v19 = vld [vmem:[#allocation8 + $0x48] sm:$0xff]  ;;  %v202_v20 = vld [vmem:[#allocation5 + $0x20] sm:$0xff] }
  0x51   :  { %1163 = vmatprep.subr.mxu0 %v210_v3  ;;  %1216 = vmatpush3.msra.mxu1 %v424_v9  ;;  %v418_v21 = vld [vmem:[#allocation8 + $0x40] sm:$0xff]  ;;  %v201_v22 = vld [vmem:[#allocation5 + $0x18] sm:$0xff]  ;;  %v200_v24 = vld [vmem:[#allocation5 + $0x10] sm:$0xff] }
  0x52   :  { %1164 = vmatpush3.msra.mxu0 %v210_v3  ;;  %1217 = vmatprep.subr.mxu1 %v423_v11  ;;  %v417_v23 = vld [vmem:[#allocation8 + $0x38] sm:$0xff]  ;;  %v416_v25 = vld [vmem:[#allocation8 + $0x30] sm:$0xff]  ;;  %v199_v26 = vld [vmem:[#allocation5 + $0x8] sm:$0xff] }
  0x53   :  { %1165 = vmatprep.subr.mxu0 %v209_v5  ;;  %1218 = vmatpush3.msra.mxu1 %v423_v11  ;;  %v415_v27 = vld [vmem:[#allocation8 + $0x28] sm:$0xff]  ;;  %v198_v29 = vld [vmem:[#allocation5] sm:$0xff]  ;;  %v413_v33 = vld [vmem:[#allocation8 + $0x18] sm:$0xff] }
  0x54   :  { %1166 = vmatpush3.msra.mxu0 %v209_v5  ;;  %1219 = vmatprep.subr.mxu1 %v422_v13  ;;  %v1022_v28 = vld [vmem:[#allocation3 + $0x8] sm:$0xff]   ;;  %v414_v30 = vld [vmem:[#allocation8 + $0x20] sm:$0xff]  ;;  %v1023_v34 = vld [vmem:[#allocation3 + $0x10] sm:$0xff]  }
  0x55   :  { %1167 = vmatprep.subr.mxu0 %v208_v7  ;;  %1220 = vmatpush3.msra.mxu1 %v422_v13  ;;  %v996_v32 = vunpack.c.l.bf16 %v1022_v28  ;;  %v997_v35 = vunpack.c.h.bf16 %v1022_v28  ;;  %v1000_v36 = vunpack.c.l.bf16 %v1023_v34  ;;  %v1024_v37 = vld [vmem:[#allocation3 + $0x18] sm:$0xff]   ;;  %v1001_v38 = vunpack.c.h.bf16 %v1023_v34  ;;  %v1025_v40 = vld [vmem:[#allocation3 + $0x20] sm:$0xff]   ;;  %v1026_v43 = vld [vmem:[#allocation3 + $0x28] sm:$0xff]  }
  0x56   :  { %1168 = vmatpush3.msra.mxu0 %v208_v7  ;;  %1221 = vmatprep.subr.mxu1 %v421_v15  ;;  %v1004_v39 = vunpack.c.l.bf16 %v1024_v37  ;;  %v1005_v41 = vunpack.c.h.bf16 %v1024_v37  ;;  %v1008_v42 = vunpack.c.l.bf16 %v1025_v40  ;;  %v1009_v44 = vunpack.c.h.bf16 %v1025_v40  ;;  %v1027_v46 = vld [vmem:[#allocation3 + $0x30] sm:$0xff]   ;;  %v1028_v49 = vld [vmem:[#allocation3 + $0x38] sm:$0xff]   ;;  %v411_v54 = vld [vmem:[#allocation8 + $0x8] sm:$0xff] }
  0x57   :  { %1169 = vmatprep.subr.mxu0 %v207_v10  ;;  %1222 = vmatpush3.msra.mxu1 %v421_v15  ;;  %v1012_v45 = vunpack.c.l.bf16 %v1026_v43  ;;  %v1013_v47 = vunpack.c.h.bf16 %v1026_v43  ;;  %v1016_v48 = vunpack.c.l.bf16 %v1027_v46  ;;  %v1017_v50 = vunpack.c.h.bf16 %v1027_v46  ;;  %v412_v53 = vld [vmem:[#allocation8 + $0x10] sm:$0xff]  ;;  %v410_v55 = vld [vmem:[#allocation8] sm:$0xff]  ;;  %v609_v56 = vld [vmem:[#allocation10 + $0x78] sm:$0xff] }
  0x58   :  { %1170 = vmatpush3.msra.mxu0 %v207_v10  ;;  %1223 = vmatprep.subr.mxu1 %v420_v17  ;;  %v1020_v51 = vunpack.c.l.bf16 %v1028_v49  ;;  %v1021_v52 = vunpack.c.h.bf16 %v1028_v49  ;;  %v608_v57 = vld [vmem:[#allocation10 + $0x70] sm:$0xff]  ;;  %v607_v58 = vld [vmem:[#allocation10 + $0x68] sm:$0xff]  ;;  %v606_v59 = vld [vmem:[#allocation10 + $0x60] sm:$0xff] }
  0x59   :  { %1171 = vmatprep.subr.mxu0 %v206_v12  ;;  %1224 = vmatpush3.msra.mxu1 %v420_v17  ;;  %v605_v60 = vld [vmem:[#allocation10 + $0x58] sm:$0xff]  ;;  %v604_v61 = vld [vmem:[#allocation10 + $0x50] sm:$0xff]  ;;  %v603_v62 = vld [vmem:[#allocation10 + $0x48] sm:$0xff] }
  0x5a   :  { %1172 = vmatpush3.msra.mxu0 %v206_v12  ;;  %1225 = vmatprep.subr.mxu1 %v419_v19  ;;  %v602_v63 = vld [vmem:[#allocation10 + $0x40] sm:$0xff]  ;;  %v601_v0 = vld [vmem:[#allocation10 + $0x38] sm:$0xff]  ;;  %v600_v1 = vld [vmem:[#allocation10 + $0x30] sm:$0xff] }
  0x5b   :  { %1173 = vmatprep.subr.mxu0 %v205_v14  ;;  %1226 = vmatpush3.msra.mxu1 %v419_v19  ;;  %v599_v2 = vld [vmem:[#allocation10 + $0x28] sm:$0xff]  ;;  %v598_v3 = vld [vmem:[#allocation10 + $0x20] sm:$0xff]  ;;  %v597_v4 = vld [vmem:[#allocation10 + $0x18] sm:$0xff] }
  0x5c   :  { %1174 = vmatpush3.msra.mxu0 %v205_v14  ;;  %1227 = vmatprep.subr.mxu1 %v418_v21  ;;  %v118_v6 = vld [vmem:[#allocation7] sm:$0xff]  ;;  %v119_v7 = vld [vmem:[#allocation7 + $0x8] sm:$0xff]  ;;  %v120_v12 = vld [vmem:[#allocation7 + $0x10] sm:$0xff] }
  0x5d   :  { %1175 = vmatprep.subr.mxu0 %v204_v16  ;;  %1228 = vmatpush3.msra.mxu1 %v418_v21  ;;  %v121_v13 = vld [vmem:[#allocation7 + $0x18] sm:$0xff]  ;;  %v123_v19 = vld [vmem:[#allocation7 + $0x28] sm:$0xff] }
  0x5e   :  { %1176 = vmatpush3.msra.mxu0 %v204_v16  ;;  %1229 = vmatprep.subr.mxu1 %v417_v23  ;;  %v129_v37 = vld [vmem:[#allocation7 + $0x58] sm:$0xff]  ;;  %v131_v43 = vld [vmem:[#allocation7 + $0x68] sm:$0xff] }
  0x5f   :  { %1177 = vmatprep.subr.mxu0 %v203_v18  ;;  %1230 = vmatpush3.msra.mxu1 %v417_v23  ;;  %v133_v49 = vld [vmem:[#allocation7 + $0x78] sm:$0xff] }
  0x60   :  { %1178 = vmatpush3.msra.mxu0 %v203_v18  ;;  %1231 = vmatprep.subr.mxu1 %v416_v25  ;;  %v122_v18 = vld [vmem:[#allocation7 + $0x20] sm:$0xff] }
  0x61   :  { %1179 = vmatprep.subr.mxu0 %v202_v20  ;;  %1232 = vmatpush3.msra.mxu1 %v416_v25  ;;  %v125_v25 = vld [vmem:[#allocation7 + $0x38] sm:$0xff] }
  0x62   :  { %1180 = vmatpush3.msra.mxu0 %v202_v20  ;;  %1233 = vmatprep.subr.mxu1 %v415_v27 }
  0x63   :  { %1181 = vmatprep.subr.mxu0 %v201_v22  ;;  %1234 = vmatpush3.msra.mxu1 %v415_v27 }
  0x64   :  { %1182 = vmatpush3.msra.mxu0 %v201_v22  ;;  %1235 = vmatprep.subr.mxu1 %v414_v30 }
  0x65   :  { %1183 = vmatprep.subr.mxu0 %v200_v24  ;;  %1236 = vmatpush3.msra.mxu1 %v414_v30  ;;  %v126_v30 = vld [vmem:[#allocation7 + $0x40] sm:$0xff] }
  0x66   :  { %1184 = vmatpush3.msra.mxu0 %v200_v24  ;;  %1237 = vmatprep.subr.mxu1 %v413_v33  ;;  %v124_v24 = vld [vmem:[#allocation7 + $0x30] sm:$0xff] }
  0x67   :  { %1185 = vmatprep.subr.mxu0 %v199_v26  ;;  %1238 = vmatpush3.msra.mxu1 %v413_v33 }
  0x68   :  { %1186 = vmatpush3.msra.mxu0 %v199_v26  ;;  %1239 = vmatprep.subr.mxu1 %v412_v53 }
  0x69   :  { %1187 = vmatprep.subr.mxu0 %v198_v29  ;;  %1240 = vmatpush3.msra.mxu1 %v412_v53  ;;  %v596_v53 = vld [vmem:[#allocation10 + $0x10] sm:$0xff] }
  0x6a   :  { %1188 = vmatpush3.msra.mxu0 %v198_v29  ;;  %1241 = vmatprep.subr.mxu1 %v411_v54 }
  0x6b   :  { %1190 = vmatmul.mubr.f32.vlgmr.msra.gmra.mxu0 %v993_v31  ;;  %1242 = vmatpush3.msra.mxu1 %v411_v54  ;;  %v127_v31 = vld [vmem:[#allocation7 + $0x48] sm:$0xff] }
  0x6c   :  { %1192 = vmatprep.mubr.f32.mxu0 %v996_v32  ;;  %1243 = vmatprep.subr.mxu1 %v410_v55  ;;  %v595_v54 = vld [vmem:[#allocation10 + $0x8] sm:$0xff] }
  0x6d   :  { %1244 = vmatpush3.msra.mxu1 %v410_v55  ;;  %1269 = vmatprep.subr.mxu0 %v609_v56  ;;  %v594_v55 = vld [vmem:[#allocation10] sm:$0xff] }
  0x6e   :  { %1270 = vmatpush3.msra.mxu0 %v609_v56  ;;  %v793_v56 = vld [vmem:[#allocation11 + $0x78] sm:$0xff] }
  0x6f   :  { %1193 = vmatmul.mubr.f32.gmra.mxu0 %v997_v35  ;;  %1271 = vmatprep.subr.mxu0 %v608_v57 }
  0x70   :  { %1195 = vmatprep.mubr.f32.mxu0 %v1000_v36  ;;  %1272 = vmatpush3.msra.mxu0 %v608_v57  ;;  %v128_v36 = vld [vmem:[#allocation7 + $0x50] sm:$0xff] }
  0x71   :  { %1273 = vmatprep.subr.mxu0 %v607_v58  ;;  %v792_v57 = vld [vmem:[#allocation11 + $0x70] sm:$0xff]  ;;  %1325 = vmatprep.subr.mxu1 %v793_v56 }
  0x72   :  { %1274 = vmatpush3.msra.mxu0 %v607_v58  ;;  %v791_v58 = vld [vmem:[#allocation11 + $0x68] sm:$0xff] }
  0x73   :  { %1196 = vmatmul.mubr.f32.gmra.mxu0 %v1001_v38  ;;  %1275 = vmatprep.subr.mxu0 %v606_v59 }
  0x74   :  { %1198 = vmatprep.mubr.f32.mxu0 %v1004_v39  ;;  %1276 = vmatpush3.msra.mxu0 %v606_v59  ;;  %v790_v59 = vld [vmem:[#allocation11 + $0x60] sm:$0xff] }
  0x75   :  { %1277 = vmatprep.subr.mxu0 %v605_v60 }
  0x76   :  { %1278 = vmatpush3.msra.mxu0 %v605_v60  ;;  %v789_v60 = vld [vmem:[#allocation11 + $0x58] sm:$0xff] }
  0x77   :  { %1199 = vmatmul.mubr.f32.gmra.mxu0 %v1005_v41  ;;  %1279 = vmatprep.subr.mxu0 %v604_v61 }
  0x78   :  { %1201 = vmatprep.mubr.f32.mxu0 %v1008_v42  ;;  %1280 = vmatpush3.msra.mxu0 %v604_v61  ;;  %v130_v42 = vld [vmem:[#allocation7 + $0x60] sm:$0xff]  ;;  %v788_v61 = vld [vmem:[#allocation11 + $0x50] sm:$0xff] }
  0x79   :  { %1281 = vmatprep.subr.mxu0 %v603_v62 }
  0x7a   :  { %1282 = vmatpush3.msra.mxu0 %v603_v62  ;;  %v787_v62 = vld [vmem:[#allocation11 + $0x48] sm:$0xff] }
  0x7b   :  { %1202 = vmatmul.mubr.f32.gmra.mxu0 %v1009_v44  ;;  %1283 = vmatprep.subr.mxu0 %v602_v63 }
  0x7c   :  { %1204 = vmatprep.mubr.f32.mxu0 %v1012_v45  ;;  %1284 = vmatpush3.msra.mxu0 %v602_v63  ;;  %v786_v63 = vld [vmem:[#allocation11 + $0x40] sm:$0xff] }
  0x7d   :  { %1285 = vmatprep.subr.mxu0 %v601_v0 }
  0x7e   :  { %1286 = vmatpush3.msra.mxu0 %v601_v0  ;;  %v785_v0 = vld [vmem:[#allocation11 + $0x38] sm:$0xff] }
  0x7f   :  { %1205 = vmatmul.mubr.f32.gmra.mxu0 %v1013_v47  ;;  %1287 = vmatprep.subr.mxu0 %v600_v1 }
  0x80   :  { %1207 = vmatprep.mubr.f32.mxu0 %v1016_v48  ;;  %1288 = vmatpush3.msra.mxu0 %v600_v1  ;;  %v132_v48 = vld [vmem:[#allocation7 + $0x70] sm:$0xff] }
  0x81   :  { %1289 = vmatprep.subr.mxu0 %v599_v2  ;;  %v784_v1 = vld [vmem:[#allocation11 + $0x30] sm:$0xff] }
  0x82   :  { %1290 = vmatpush3.msra.mxu0 %v599_v2  ;;  %v783_v2 = vld [vmem:[#allocation11 + $0x28] sm:$0xff] }
  0x83   :  { %1208 = vmatmul.mubr.f32.gmra.mxu0 %v1017_v50  ;;  %1291 = vmatprep.subr.mxu0 %v598_v3 }
  0x84   :  { %1210 = vmatprep.mubr.f32.mxu0 %v1020_v51  ;;  %1292 = vmatpush3.msra.mxu0 %v598_v3  ;;  %v782_v3 = vld [vmem:[#allocation11 + $0x20] sm:$0xff] }
  0x85   :  { %1293 = vmatprep.subr.mxu0 %v597_v4 }
  0x86   :  { %1294 = vmatpush3.msra.mxu0 %v597_v4  ;;  %v781_v4 = vld [vmem:[#allocation11 + $0x18] sm:$0xff] }
  0x87   :  { %1211 = vmatmul.mubr.f32.gmra.mxu0 %v1021_v52  ;;  %1295 = vmatprep.subr.mxu0 %v596_v53 }
  0x88   :  { %1296 = vmatpush3.msra.mxu0 %v596_v53 }
  0x89   :  { %1297 = vmatprep.subr.mxu0 %v595_v54 }
  0x8a   :  { %1298 = vmatpush3.msra.mxu0 %v595_v54  ;;  %v780_v54 = vld [vmem:[#allocation11 + $0x10] sm:$0xff] }
  0x8b   :  { %1299 = vmatprep.subr.mxu0 %v594_v55 }
  0x8c   :  { %1300 = vmatpush3.msra.mxu0 %v594_v55  ;;  %v779_v55 = vld [vmem:[#allocation11 + $0x8] sm:$0xff] }
 0x12b   :  { %v1191_v5 = vpop.f32.mrf.mxu0 }
 0x12c   :  { %v360_v10 = vadd.f32 %v1191_v5, %v119_v7  ;;  %v987_v5 = vld [vmem:[%s1693_s4] ss:$0 sm:$0xff] }
 0x12d   :  { %v280_v8 = vpop.f32.mrf.mxu0 }
 0x12e   :  { %v359_v9 = vadd.f32 %v280_v8, %v118_v6 }
 0x12f   :  { %v1194_v11 = vpop.f32.mrf.mxu0 }
 0x130   :  { %1245 = vmatprep.mubr.f32.mxu1 %v359_v9  ;;  %v362_v16 = vadd.f32 %v1194_v11, %v121_v13 }
 0x131   :  { %v290_v14 = vpop.f32.mrf.mxu0  ;;  %1246 = vmatmul.mubr.f32.vlgmr.msra.gmra.mxu1 %v360_v10 }
 0x132   :  { %v361_v15 = vadd.f32 %v290_v14, %v120_v12  ;;  %1326 = vmatpush3.msra.mxu1 %v793_v56  ;;  %v778_v56 = vld [vmem:[#allocation11] sm:$0xff] }
 0x133   :  { %v1197_v17 = vpop.f32.mrf.mxu0  ;;  %1327 = vmatprep.subr.mxu1 %v792_v57 }
 0x134   :  { %1248 = vmatprep.mubr.f32.mxu1 %v361_v15  ;;  %v364_v22 = vadd.f32 %v1197_v17, %v123_v19  ;;  %1328 = vmatpush3.msra.mxu1 %v792_v57  ;;  %v988_v57 = vld [vmem:[%s1695_s6] ss:$0 sm:$0xff] }
 0x135   :  { %v300_v20 = vpop.f32.mrf.mxu0  ;;  %1249 = vmatmul.mubr.f32.gmra.mxu1 %v362_v16  ;;  %1329 = vmatprep.subr.mxu1 %v791_v58 }
 0x136   :  { %v363_v21 = vadd.f32 %v300_v20, %v122_v18  ;;  %1330 = vmatpush3.msra.mxu1 %v791_v58 }
 0x137   :  { %v1200_v23 = vpop.f32.mrf.mxu0  ;;  %1331 = vmatprep.subr.mxu1 %v790_v59 }
 0x138   :  { %1251 = vmatprep.mubr.f32.mxu1 %v363_v21  ;;  %v366_v28 = vadd.f32 %v1200_v23, %v125_v25  ;;  %1332 = vmatpush3.msra.mxu1 %v790_v59 }
 0x139   :  { %v310_v26 = vpop.f32.mrf.mxu0  ;;  %1252 = vmatmul.mubr.f32.gmra.mxu1 %v364_v22  ;;  %1333 = vmatprep.subr.mxu1 %v789_v60 }
 0x13a   :  { %v365_v27 = vadd.f32 %v310_v26, %v124_v24  ;;  %1334 = vmatpush3.msra.mxu1 %v789_v60 }
 0x13b   :  { %v1203_v29 = vpop.f32.mrf.mxu0  ;;  %1335 = vmatprep.subr.mxu1 %v788_v61 }
 0x13c   :  { %1254 = vmatprep.mubr.f32.mxu1 %v365_v27  ;;  %v368_v34 = vadd.f32 %v1203_v29, %v127_v31  ;;  %1336 = vmatpush3.msra.mxu1 %v788_v61 }
 0x13d   :  { %v320_v32 = vpop.f32.mrf.mxu0  ;;  %1255 = vmatmul.mubr.f32.gmra.mxu1 %v366_v28  ;;  %1337 = vmatprep.subr.mxu1 %v787_v62 }
 0x13e   :  { %v367_v33 = vadd.f32 %v320_v32, %v126_v30  ;;  %1338 = vmatpush3.msra.mxu1 %v787_v62 }
 0x13f   :  { %v1206_v35 = vpop.f32.mrf.mxu0  ;;  %1339 = vmatprep.subr.mxu1 %v786_v63 }
 0x140   :  { %1257 = vmatprep.mubr.f32.mxu1 %v367_v33  ;;  %v370_v40 = vadd.f32 %v1206_v35, %v129_v37  ;;  %1340 = vmatpush3.msra.mxu1 %v786_v63 }
 0x141   :  { %v330_v38 = vpop.f32.mrf.mxu0  ;;  %1258 = vmatmul.mubr.f32.gmra.mxu1 %v368_v34  ;;  %1341 = vmatprep.subr.mxu1 %v785_v0 }
 0x142   :  { %v369_v39 = vadd.f32 %v330_v38, %v128_v36  ;;  %1342 = vmatpush3.msra.mxu1 %v785_v0 }
 0x143   :  { %v1209_v41 = vpop.f32.mrf.mxu0  ;;  %1343 = vmatprep.subr.mxu1 %v784_v1 }
 0x144   :  { %1260 = vmatprep.mubr.f32.mxu1 %v369_v39  ;;  %v372_v46 = vadd.f32 %v1209_v41, %v131_v43  ;;  %1344 = vmatpush3.msra.mxu1 %v784_v1 }
 0x145   :  { %v340_v44 = vpop.f32.mrf.mxu0  ;;  %1261 = vmatmul.mubr.f32.gmra.mxu1 %v370_v40  ;;  %1345 = vmatprep.subr.mxu1 %v783_v2 }
 0x146   :  { %v371_v45 = vadd.f32 %v340_v44, %v130_v42  ;;  %1346 = vmatpush3.msra.mxu1 %v783_v2 }
 0x147   :  { %v1212_v47 = vpop.f32.mrf.mxu0  ;;  %1347 = vmatprep.subr.mxu1 %v782_v3 }
 0x148   :  { %1263 = vmatprep.mubr.f32.mxu1 %v371_v45  ;;  %v374_v52 = vadd.f32 %v1212_v47, %v133_v49  ;;  %1348 = vmatpush3.msra.mxu1 %v782_v3 }
 0x149   :  { %v350_v50 = vpop.f32.mrf.mxu0  ;;  %1264 = vmatmul.mubr.f32.gmra.mxu1 %v372_v46  ;;  %1349 = vmatprep.subr.mxu1 %v781_v4 }
 0x14a   :  { %v373_v51 = vadd.f32 %v350_v50, %v132_v48  ;;  %1350 = vmatpush3.msra.mxu1 %v781_v4 }
 0x14b   :  { %1351 = vmatprep.subr.mxu1 %v780_v54 }
 0x14c   :  { %1266 = vmatprep.mubr.f32.mxu1 %v373_v51  ;;  %1352 = vmatpush3.msra.mxu1 %v780_v54 }
 0x14d   :  { %1267 = vmatmul.mubr.f32.gmra.mxu1 %v374_v52  ;;  %1353 = vmatprep.subr.mxu1 %v779_v55 }
 0x14e   :  { %1354 = vmatpush3.msra.mxu1 %v779_v55 }
 0x14f   :  { %1355 = vmatprep.subr.mxu1 %v778_v56 }
 0x150   :  { %1356 = vmatpush3.msra.mxu1 %v778_v56 }
 0x1f1   :  { %v1247_v6 = vpop.f32.mrf.mxu1 }
 0x1f2   :  { %v505_v7 = vadd.f32 %v1247_v6, %v987_v5 }
 0x1f3   :  { %v499_v8 = vpop.f32.mrf.mxu1 }
 0x1f4   :  { %v500_v9 = vadd.f32 %v987_v5, %v499_v8  ;;  %v579_v12 = vmax.f32 %v505_v7, 0.0 }
 0x1f5   :  { %v1250_v10 = vpop.f32.mrf.mxu1 }
 0x1f6   :  { %v578_v11 = vmax.f32 %v500_v9, 0.0  ;;  %v515_v13 = vadd.f32 %v1250_v10, %v987_v5 }
 0x1f7   :  { %v509_v14 = vpop.f32.mrf.mxu1 }
 0x1f8   :  { %v510_v15 = vadd.f32 %v987_v5, %v509_v14  ;;  %1301 = vmatprep.mubr.f32.mxu0 %v578_v11  ;;  %v581_v18 = vmax.f32 %v515_v13, 0.0 }
 0x1f9   :  { %v1253_v16 = vpop.f32.mrf.mxu1  ;;  %1302 = vmatmul.mubr.f32.vlgmr.msra.gmra.mxu0 %v579_v12 }
 0x1fa   :  { %v580_v17 = vmax.f32 %v510_v15, 0.0  ;;  %v525_v19 = vadd.f32 %v1253_v16, %v987_v5 }
 0x1fb   :  { %v519_v20 = vpop.f32.mrf.mxu1 }
 0x1fc   :  { %v520_v21 = vadd.f32 %v987_v5, %v519_v20  ;;  %1304 = vmatprep.mubr.f32.mxu0 %v580_v17  ;;  %v583_v24 = vmax.f32 %v525_v19, 0.0 }
 0x1fd   :  { %v1256_v22 = vpop.f32.mrf.mxu1  ;;  %1305 = vmatmul.mubr.f32.gmra.mxu0 %v581_v18 }
 0x1fe   :  { %v582_v23 = vmax.f32 %v520_v21, 0.0  ;;  %v535_v25 = vadd.f32 %v1256_v22, %v987_v5 }
 0x1ff   :  { %v529_v26 = vpop.f32.mrf.mxu1 }
 0x200   :  { %v530_v27 = vadd.f32 %v987_v5, %v529_v26  ;;  %1307 = vmatprep.mubr.f32.mxu0 %v582_v23  ;;  %v585_v30 = vmax.f32 %v535_v25, 0.0 }
 0x201   :  { %v1259_v28 = vpop.f32.mrf.mxu1  ;;  %1308 = vmatmul.mubr.f32.gmra.mxu0 %v583_v24 }
 0x202   :  { %v584_v29 = vmax.f32 %v530_v27, 0.0  ;;  %v545_v31 = vadd.f32 %v1259_v28, %v987_v5 }
 0x203   :  { %v539_v32 = vpop.f32.mrf.mxu1 }
 0x204   :  { %v540_v33 = vadd.f32 %v987_v5, %v539_v32  ;;  %1310 = vmatprep.mubr.f32.mxu0 %v584_v29  ;;  %v587_v36 = vmax.f32 %v545_v31, 0.0 }
 0x205   :  { %v1262_v34 = vpop.f32.mrf.mxu1  ;;  %1311 = vmatmul.mubr.f32.gmra.mxu0 %v585_v30 }
 0x206   :  { %v586_v35 = vmax.f32 %v540_v33, 0.0  ;;  %v555_v37 = vadd.f32 %v1262_v34, %v987_v5 }
 0x207   :  { %v549_v38 = vpop.f32.mrf.mxu1 }
 0x208   :  { %v550_v39 = vadd.f32 %v987_v5, %v549_v38  ;;  %1313 = vmatprep.mubr.f32.mxu0 %v586_v35  ;;  %v589_v42 = vmax.f32 %v555_v37, 0.0 }
 0x209   :  { %v1265_v40 = vpop.f32.mrf.mxu1  ;;  %1314 = vmatmul.mubr.f32.gmra.mxu0 %v587_v36 }
 0x20a   :  { %v588_v41 = vmax.f32 %v550_v39, 0.0  ;;  %v565_v43 = vadd.f32 %v1265_v40, %v987_v5 }
 0x20b   :  { %v559_v44 = vpop.f32.mrf.mxu1 }
 0x20c   :  { %v560_v45 = vadd.f32 %v987_v5, %v559_v44  ;;  %1316 = vmatprep.mubr.f32.mxu0 %v588_v41  ;;  %v591_v48 = vmax.f32 %v565_v43, 0.0 }
 0x20d   :  { %v1268_v46 = vpop.f32.mrf.mxu1  ;;  %1317 = vmatmul.mubr.f32.gmra.mxu0 %v589_v42  ;;  %v989_v42 = vld [vmem:[%s1697_s8] ss:$0 sm:$0xff] }
 0x20e   :  { %v590_v47 = vmax.f32 %v560_v45, 0.0  ;;  %v575_v49 = vadd.f32 %v1268_v46, %v987_v5 }
 0x20f   :  { %v569_v50 = vpop.f32.mrf.mxu1 }
 0x210   :  { %v570_v51 = vadd.f32 %v987_v5, %v569_v50  ;;  %1319 = vmatprep.mubr.f32.mxu0 %v590_v47  ;;  %v593_v53 = vmax.f32 %v575_v49, 0.0 }
 0x211   :  { %1320 = vmatmul.mubr.f32.gmra.mxu0 %v591_v48 }
 0x212   :  { %v592_v52 = vmax.f32 %v570_v51, 0.0 }
 0x214   :  { %1322 = vmatprep.mubr.f32.mxu0 %v592_v52 }
 0x215   :  { %1323 = vmatmul.mubr.f32.gmra.mxu0 %v593_v53 }
 0x2b9   :  { %v1303_v58 = vpop.f32.mrf.mxu0 }
 0x2ba   :  { %v689_v59 = vadd.f32 %v1303_v58, %v988_v57 }
 0x2bb   :  { %v683_v60 = vpop.f32.mrf.mxu0 }
 0x2bc   :  { %v684_v61 = vadd.f32 %v988_v57, %v683_v60  ;;  %v763_v0 = vmax.f32 %v689_v59, 0.0 }
 0x2bd   :  { %v1306_v62 = vpop.f32.mrf.mxu0 }
 0x2be   :  { %v762_v63 = vmax.f32 %v684_v61, 0.0  ;;  %v699_v1 = vadd.f32 %v1306_v62, %v988_v57 }
 0x2bf   :  { %v693_v2 = vpop.f32.mrf.mxu0 }
 0x2c0   :  { %v694_v3 = vadd.f32 %v988_v57, %v693_v2  ;;  %1357 = vmatprep.mubr.f32.mxu1 %v762_v63  ;;  %v765_v6 = vmax.f32 %v699_v1, 0.0 }
 0x2c1   :  { %v1309_v4 = vpop.f32.mrf.mxu0  ;;  %1358 = vmatmul.mubr.f32.vlgmr.msra.gmra.mxu1 %v763_v0 }
 0x2c2   :  { %v764_v5 = vmax.f32 %v694_v3, 0.0  ;;  %v709_v7 = vadd.f32 %v1309_v4, %v988_v57 }
 0x2c3   :  { %v703_v8 = vpop.f32.mrf.mxu0 }
 0x2c4   :  { %v704_v9 = vadd.f32 %v988_v57, %v703_v8  ;;  %1360 = vmatprep.mubr.f32.mxu1 %v764_v5  ;;  %v767_v12 = vmax.f32 %v709_v7, 0.0 }
 0x2c5   :  { %v1312_v10 = vpop.f32.mrf.mxu0  ;;  %1361 = vmatmul.mubr.f32.gmra.mxu1 %v765_v6 }
 0x2c6   :  { %v766_v11 = vmax.f32 %v704_v9, 0.0  ;;  %v719_v13 = vadd.f32 %v1312_v10, %v988_v57 }
 0x2c7   :  { %v713_v14 = vpop.f32.mrf.mxu0 }
 0x2c8   :  { %v714_v15 = vadd.f32 %v988_v57, %v713_v14  ;;  %1363 = vmatprep.mubr.f32.mxu1 %v766_v11  ;;  %v769_v18 = vmax.f32 %v719_v13, 0.0 }
 0x2c9   :  { %v1315_v16 = vpop.f32.mrf.mxu0  ;;  %1364 = vmatmul.mubr.f32.gmra.mxu1 %v767_v12 }
 0x2ca   :  { %v768_v17 = vmax.f32 %v714_v15, 0.0  ;;  %v729_v19 = vadd.f32 %v1315_v16, %v988_v57 }
 0x2cb   :  { %v723_v20 = vpop.f32.mrf.mxu0 }
 0x2cc   :  { %v724_v21 = vadd.f32 %v988_v57, %v723_v20  ;;  %1366 = vmatprep.mubr.f32.mxu1 %v768_v17  ;;  %v771_v24 = vmax.f32 %v729_v19, 0.0 }
 0x2cd   :  { %v1318_v22 = vpop.f32.mrf.mxu0  ;;  %1367 = vmatmul.mubr.f32.gmra.mxu1 %v769_v18 }
 0x2ce   :  { %v770_v23 = vmax.f32 %v724_v21, 0.0  ;;  %v739_v25 = vadd.f32 %v1318_v22, %v988_v57 }
 0x2cf   :  { %v733_v26 = vpop.f32.mrf.mxu0 }
 0x2d0   :  { %v734_v27 = vadd.f32 %v988_v57, %v733_v26  ;;  %1369 = vmatprep.mubr.f32.mxu1 %v770_v23  ;;  %v773_v30 = vmax.f32 %v739_v25, 0.0 }
 0x2d1   :  { %v1321_v28 = vpop.f32.mrf.mxu0  ;;  %1370 = vmatmul.mubr.f32.gmra.mxu1 %v771_v24 }
 0x2d2   :  { %v772_v29 = vmax.f32 %v734_v27, 0.0  ;;  %v749_v31 = vadd.f32 %v1321_v28, %v988_v57 }
 0x2d3   :  { %v743_v32 = vpop.f32.mrf.mxu0 }
 0x2d4   :  { %v744_v33 = vadd.f32 %v988_v57, %v743_v32  ;;  %1372 = vmatprep.mubr.f32.mxu1 %v772_v29  ;;  %v775_v36 = vmax.f32 %v749_v31, 0.0 }
 0x2d5   :  { %v1324_v34 = vpop.f32.mrf.mxu0  ;;  %1373 = vmatmul.mubr.f32.gmra.mxu1 %v773_v30 }
 0x2d6   :  { %v774_v35 = vmax.f32 %v744_v33, 0.0  ;;  %v759_v37 = vadd.f32 %v1324_v34, %v988_v57 }
 0x2d7   :  { %v753_v38 = vpop.f32.mrf.mxu0 }
 0x2d8   :  { %v754_v39 = vadd.f32 %v988_v57, %v753_v38  ;;  %1375 = vmatprep.mubr.f32.mxu1 %v774_v35  ;;  %v777_v41 = vmax.f32 %v759_v37, 0.0 }
 0x2d9   :  { %1376 = vmatmul.mubr.f32.gmra.mxu1 %v775_v36 }
 0x2da   :  { %v776_v40 = vmax.f32 %v754_v39, 0.0 }
 0x2dc   :  { %1378 = vmatprep.mubr.f32.mxu1 %v776_v40 }
 0x2dd   :  { %1379 = vmatmul.mubr.f32.gmra.mxu1 %v777_v41 }
 0x381   :  { %v1359_v43 = vpop.f32.mrf.mxu1 }
 0x382   :  { %v873_v44 = vadd.f32 %v1359_v43, %v989_v42 }
 0x383   :  { %v867_v45 = vpop.f32.mrf.mxu1 }
 0x384   :  { %v947_v46 = vmax.f32 %v873_v44, 0.0  ;;  %v868_v47 = vadd.f32 %v989_v42, %v867_v45 }
 0x385   :  { %v1362_v48 = vpop.f32.mrf.mxu1 }
 0x386   :  { %964 = vst.msk [vmem:[%s1698_s9 + $0x8] sm:$0xff] %vm962_vm0, %v947_v46  ;;  %v946_v49 = vmax.f32 %v868_v47, 0.0  ;;  %v883_v50 = vadd.f32 %v1362_v48, %v989_v42 }
 0x387   :  { %v877_v51 = vpop.f32.mrf.mxu1 }
 0x388   :  { %963 = vst.msk [vmem:[%s1698_s9] sm:$0xff] %vm962_vm0, %v946_v49  ;;  %v949_v52 = vmax.f32 %v883_v50, 0.0  ;;  %v878_v53 = vadd.f32 %v989_v42, %v877_v51 }
 0x389   :  { %v1365_v54 = vpop.f32.mrf.mxu1 }
 0x38a   :  { %966 = vst.msk [vmem:[%s1698_s9 + $0x18] sm:$0xff] %vm962_vm0, %v949_v52  ;;  %v948_v55 = vmax.f32 %v878_v53, 0.0  ;;  %v893_v56 = vadd.f32 %v1365_v54, %v989_v42 }
 0x38b   :  { %v887_v57 = vpop.f32.mrf.mxu1 }
 0x38c   :  { %965 = vst.msk [vmem:[%s1698_s9 + $0x10] sm:$0xff] %vm962_vm0, %v948_v55  ;;  %v951_v58 = vmax.f32 %v893_v56, 0.0  ;;  %v888_v59 = vadd.f32 %v989_v42, %v887_v57 }
 0x38d   :  { %v1368_v60 = vpop.f32.mrf.mxu1 }
 0x38e   :  { %968 = vst.msk [vmem:[%s1698_s9 + $0x28] sm:$0xff] %vm962_vm0, %v951_v58  ;;  %v950_v61 = vmax.f32 %v888_v59, 0.0  ;;  %v903_v62 = vadd.f32 %v1368_v60, %v989_v42 }
 0x38f   :  { %v897_v63 = vpop.f32.mrf.mxu1 }
 0x390   :  { %967 = vst.msk [vmem:[%s1698_s9 + $0x20] sm:$0xff] %vm962_vm0, %v950_v61  ;;  %v953_v0 = vmax.f32 %v903_v62, 0.0  ;;  %v898_v1 = vadd.f32 %v989_v42, %v897_v63 }
 0x391   :  { %v1371_v2 = vpop.f32.mrf.mxu1 }
 0x392   :  { %970 = vst.msk [vmem:[%s1698_s9 + $0x38] sm:$0xff] %vm962_vm0, %v953_v0  ;;  %v952_v3 = vmax.f32 %v898_v1, 0.0  ;;  %v913_v4 = vadd.f32 %v1371_v2, %v989_v42 }
 0x393   :  { %v907_v5 = vpop.f32.mrf.mxu1 }
 0x394   :  { %969 = vst.msk [vmem:[%s1698_s9 + $0x30] sm:$0xff] %vm962_vm0, %v952_v3  ;;  %v955_v6 = vmax.f32 %v913_v4, 0.0  ;;  %v908_v7 = vadd.f32 %v989_v42, %v907_v5 }
 0x395   :  { %v1374_v8 = vpop.f32.mrf.mxu1 }
 0x396   :  { %972 = vst.msk [vmem:[%s1698_s9 + $0x48] sm:$0xff] %vm962_vm0, %v955_v6  ;;  %v954_v9 = vmax.f32 %v908_v7, 0.0  ;;  %v923_v10 = vadd.f32 %v1374_v8, %v989_v42 }
 0x397   :  { %v917_v11 = vpop.f32.mrf.mxu1 }
 0x398   :  { %971 = vst.msk [vmem:[%s1698_s9 + $0x40] sm:$0xff] %vm962_vm0, %v954_v9  ;;  %v957_v12 = vmax.f32 %v923_v10, 0.0  ;;  %v918_v13 = vadd.f32 %v989_v42, %v917_v11 }
 0x399   :  { %v1377_v14 = vpop.f32.mrf.mxu1 }
 0x39a   :  { %974 = vst.msk [vmem:[%s1698_s9 + $0x58] sm:$0xff] %vm962_vm0, %v957_v12  ;;  %v956_v15 = vmax.f32 %v918_v13, 0.0  ;;  %v933_v16 = vadd.f32 %v1377_v14, %v989_v42 }
 0x39b   :  { %v927_v17 = vpop.f32.mrf.mxu1 }
 0x39c   :  { %973 = vst.msk [vmem:[%s1698_s9 + $0x50] sm:$0xff] %vm962_vm0, %v956_v15  ;;  %v959_v18 = vmax.f32 %v933_v16, 0.0  ;;  %v928_v19 = vadd.f32 %v989_v42, %v927_v17 }
 0x39d   :  { %v1380_v20 = vpop.f32.mrf.mxu1 }
 0x39e   :  { %976 = vst.msk [vmem:[%s1698_s9 + $0x68] sm:$0xff] %vm962_vm0, %v959_v18  ;;  %v958_v21 = vmax.f32 %v928_v19, 0.0  ;;  %v943_v22 = vadd.f32 %v1380_v20, %v989_v42 }
 0x39f   :  { %v937_v23 = vpop.f32.mrf.mxu1 }
 0x3a0   :  { %975 = vst.msk [vmem:[%s1698_s9 + $0x60] sm:$0xff] %vm962_vm0, %v958_v21  ;;  %v961_v24 = vmax.f32 %v943_v22, 0.0  ;;  %v938_v25 = vadd.f32 %v989_v42, %v937_v23 }
 0x3a2   :  { %978 = vst.msk [vmem:[%s1698_s9 + $0x78] sm:$0xff] %vm962_vm0, %v961_v24  ;;  %v960_v26 = vmax.f32 %v938_v25, 0.0 }
 0x3a4   :  { %977 = vst.msk [vmem:[%s1698_s9 + $0x70] sm:$0xff] %vm962_vm0, %v960_v26 }
 0x3a5   :  { %983 = vsyncpa [#allocation4], 1 }
 0x3a6   :  { %984 = vsyncpa [#allocation6], 1 }
 0x3a7   :  { %985 = vsyncpa [#allocation9], 1 }
 0x3a8   :  { %986 = vsyncpa [#allocation12], 1 }

</bundles_post_ra>
